<compile_context>
chip_gen: v7x
topology: tpu7x:2x2x1
jax: 0.10.0
libtpu: 0.0.40
codegen_flags: <defaults>
</compile_context>

<pallas_src>
import functools

import jax
import jax.numpy as jnp
import numpy as np
from jax import lax
from jax.experimental import pallas as pl
from jax.experimental.pallas import tpu as pltpu


def _round_up(x, m):
    return (x + m - 1) // m * m


def _mmd_tile_kernel(scales_ref, row_ref, col_ref, sqr_ref, sqc_ref,
                     wr_ref, wc_ref, out_ref, *, kernel_num, use_squaring):
    j = pl.program_id(1)

    @pl.when(j == 0)
    def _init():
        out_ref[...] = jnp.zeros_like(out_ref)

    # Per-tile Gram matrix, contracting the lane dim of both operands
    # (no transpose), f32 accumulation on the MXU.
    gram = lax.dot_general(
        row_ref[...], col_ref[...],
        dimension_numbers=(((1,), (1,)), ((), ())),
        preferred_element_type=jnp.float32)                       # (Tm, Tn)

    # Pairwise squared distances from precomputed norms; clamp Gram-form
    # cancellation at 0.
    l2 = jnp.maximum(sqr_ref[...] + sqc_ref[...] - 2.0 * gram, 0.0)

    if use_squaring:
        # Exact for kernel_mul == 2: exp once (largest bandwidth), then the
        # remaining ladder terms are repeated elementwise squarings (VALU).
        e = jnp.exp(l2 * scales_ref[kernel_num - 1])
        kmat = e
        for _ in range(kernel_num - 1):
            e = e * e
            kmat = kmat + e
    else:
        kmat = jnp.exp(l2 * scales_ref[0])
        for i in range(1, kernel_num):
            kmat = kmat + jnp.exp(l2 * scales_ref[i])

    # Single weighted lane-reduce per tile; row weights applied to the (Tm,1)
    # partial.  Weights are +1 (source), -1 (target), 0 (padding).
    rows = jnp.sum(kmat * wc_ref[...], axis=1, keepdims=True)     # (Tm, 1)
    out_ref[...] += rows * wr_ref[...]


def mmd_loss(source, target, kernel_mul=2.0, kernel_num=5, gram_dtype=None):
    """MMD loss between source (B, D) and target (B, D). Returns a scalar.

    gram_dtype: optional dtype (e.g. jnp.bfloat16) for the MXU Gram operands
    only; norms/bandwidth/ladder stay f32.  Default keeps the input dtype.
    """
    B, D = source.shape
    assert target.shape == (B, D)
    kernel_mul = float(kernel_mul)
    kernel_num = int(kernel_num)
    n = 2 * B

    total = jnp.concatenate([source, target], axis=0)             # (n, D)
    tot32 = total.astype(jnp.float32)

    # Closed-form sum of all pairwise squared distances (O(nD), no n x n
    # matrix):  sum_ij ||x_i - x_j||^2 = 2n * sum_i ||x_i||^2 - 2 ||sum_i x_i||^2
    sq_norms = jnp.sum(tot32 * tot32, axis=1)                     # (n,)
    col_sums = jnp.sum(tot32, axis=0)                             # (D,)
    l2_sum = 2.0 * n * jnp.sum(sq_norms) - 2.0 * jnp.sum(col_sums * col_sums)
    bandwidth = l2_sum / float(n * n - n)
    bandwidth = bandwidth / (kernel_mul ** (kernel_num // 2))
    scales = jnp.stack(
        [-1.0 / (bandwidth * (kernel_mul ** i)) for i in range(kernel_num)]
    ).astype(jnp.float32)                                         # (kernel_num,)

    # Tile sizes: big tiles amortize per-step overhead; sized so double-buffered
    # (T, Dp) operand blocks + a few (Tm, Tn) f32 temporaries fit v7x's 64 MiB.
    TILE = 512
    if n <= TILE:
        tm = tn = _round_up(n, 8)
    else:
        tm = tn = TILE
    n_pad = _round_up(n, tm)
    d_pad = _round_up(D, 128)

    op_dtype = total.dtype if gram_dtype is None else gram_dtype
    total_pad = jnp.zeros((n_pad, d_pad), op_dtype).at[:n, :D].set(
        total.astype(op_dtype))

    # +1 for source rows, -1 for target rows, 0 for padding rows.
    w = jnp.concatenate([
        jnp.ones((B,), jnp.float32),
        -jnp.ones((B,), jnp.float32),
        jnp.zeros((n_pad - n,), jnp.float32),
    ])
    sqn = jnp.concatenate([sq_norms, jnp.zeros((n_pad - n,), jnp.float32)])

    sq_row = sqn[:, None]        # (n_pad, 1)
    sq_col = sqn[None, :]        # (1, n_pad)
    w_row = w[:, None]           # (n_pad, 1)
    w_col = w[None, :]           # (1, n_pad)

    grid = (n_pad // tm, n_pad // tn)

    kernel = functools.partial(
        _mmd_tile_kernel,
        kernel_num=kernel_num,
        use_squaring=(kernel_mul == 2.0),
    )

    out = pl.pallas_call(
        kernel,
        out_shape=jax.ShapeDtypeStruct((n_pad, 1), jnp.float32),
        grid_spec=pltpu.PrefetchScalarGridSpec(
            num_scalar_prefetch=0,
            grid=grid,
            in_specs=[
                pl.BlockSpec(memory_space=pltpu.MemorySpace.SMEM),   # scales
                pl.BlockSpec((tm, d_pad), lambda i, j: (i, 0)),      # row block
                pl.BlockSpec((tn, d_pad), lambda i, j: (j, 0)),      # col block
                pl.BlockSpec((tm, 1), lambda i, j: (i, 0)),          # sq_row
                pl.BlockSpec((1, tn), lambda i, j: (0, j)),          # sq_col
                pl.BlockSpec((tm, 1), lambda i, j: (i, 0)),          # w_row
                pl.BlockSpec((1, tn), lambda i, j: (0, j)),          # w_col
            ],
            out_specs=pl.BlockSpec((tm, 1), lambda i, j: (i, 0)),
        ),
        compiler_params=pltpu.CompilerParams(
            dimension_semantics=("parallel", "arbitrary"),
            vmem_limit_bytes=48 * 1024 * 1024,
        ),
    )(scales, total_pad, total_pad, sq_row, sq_col, w_row, w_col)

    return jnp.sum(out) / jnp.float32(B * B)


def _mmd_loss_ref(source, target, kernel_mul=2.0, kernel_num=5):
    """Pure-JAX reference mirroring the PyTorch module."""
    B = source.shape[0]
    total = jnp.concatenate([source, target], axis=0).astype(jnp.float32)
    n = total.shape[0]
    diff = total[None, :, :] - total[:, None, :]
    l2 = jnp.sum(diff * diff, axis=2)
    bandwidth = jnp.sum(l2) / (n * n - n)
    bandwidth = bandwidth / (kernel_mul ** (kernel_num // 2))
    kmat = sum(jnp.exp(-l2 / (bandwidth * kernel_mul ** i)) for i in range(kernel_num))
    xx = kmat[:B, :B]
    yy = kmat[B:, B:]
    xy = kmat[:B, B:]
    yx = kmat[B:, :B]
    return jnp.mean(xx + yy - xy - yx)


if __name__ == "__main__":
    key = jax.random.PRNGKey(0)
    k1, k2 = jax.random.split(key)
    B, D = 8, 32
    source = jax.random.normal(k1, (B, D), dtype=jnp.float32)
    target = jax.random.normal(k2, (B, D), dtype=jnp.float32) + 0.5

    loss = mmd_loss(source, target)
    jax.block_until_ready(loss)

    ref = _mmd_loss_ref(source, target)
    np.testing.assert_allclose(np.asarray(loss), np.asarray(ref), rtol=1e-5, atol=1e-5)

    print("KERNEL_OK")
</pallas_src>

<mosaic_0001>
module attributes {stable_mosaic.version = 11 : i64} {
  func.func @_mmd_tile_kernel(%arg0: i32, %arg1: i32, %arg2: memref<5xf32, #tpu.memory_space<smem>>, %arg3: memref<16x128xf32, #tpu.memory_space<vmem>>, %arg4: memref<16x128xf32, #tpu.memory_space<vmem>>, %arg5: memref<16x1xf32, #tpu.memory_space<vmem>>, %arg6: memref<1x16xf32, #tpu.memory_space<vmem>>, %arg7: memref<16x1xf32, #tpu.memory_space<vmem>>, %arg8: memref<1x16xf32, #tpu.memory_space<vmem>>, %arg9: memref<16x1xf32, #tpu.memory_space<vmem>>) attributes {dimension_semantics = [#tpu.dimension_semantics<parallel>, #tpu.dimension_semantics<arbitrary>], iteration_bounds = array<i64: 1, 1>, scalar_prefetch = 0 : i64, scratch_operands = 0 : i64, tpu.core_type = #tpu.core_type<tc>, window_params = [{transform_indices = @transform_0, window_bounds = array<i64: 5>}, {transform_indices = @transform_1, window_bounds = array<i64: 16, 128>}, {transform_indices = @transform_2, window_bounds = array<i64: 16, 128>}, {transform_indices = @transform_3, window_bounds = array<i64: 16, 1>}, {transform_indices = @transform_4, window_bounds = array<i64: 1, 16>}, {transform_indices = @transform_5, window_bounds = array<i64: 16, 1>}, {transform_indices = @transform_6, window_bounds = array<i64: 1, 16>}, {transform_indices = @transform_7, window_bounds = array<i64: 16, 1>}]} {
    %c0_i32 = arith.constant 0 : i32
    %0 = arith.cmpi eq, %arg1, %c0_i32 : i32
    %1 = arith.extui %0 : i1 to i32
    %c0_i32_0 = arith.constant 0 : i32
    %2 = arith.cmpi ne, %1, %c0_i32_0 : i32
    scf.if %2 {
      %cst_19 = arith.constant 0.000000e+00 : f32
      %38 = vector.broadcast %cst_19 : f32 to vector<16x1xf32>
      %c0_20 = arith.constant 0 : index
      %c0_21 = arith.constant 0 : index
      %39 = vector.load %arg9[%c0_20, %c0_21] : memref<16x1xf32, #tpu.memory_space<vmem>>, vector<16x1xf32>
      tpu.vector_store %arg9[%c0_20, %c0_21], %38 {strides = array<i32>} : memref<16x1xf32, #tpu.memory_space<vmem>>, vector<16x1xf32>,
    } else {
    }
    %c0 = arith.constant 0 : index
    %c0_1 = arith.constant 0 : index
    %3 = vector.load %arg3[%c0, %c0_1] : memref<16x128xf32, #tpu.memory_space<vmem>>, vector<16x128xf32>
    %c0_2 = arith.constant 0 : index
    %c0_3 = arith.constant 0 : index
    %4 = vector.load %arg4[%c0_2, %c0_3] : memref<16x128xf32, #tpu.memory_space<vmem>>, vector<16x128xf32>
    %cst = arith.constant dense<0.000000e+00> : vector<16x16xf32>
    %5 = tpu.matmul %3, %4, %cst {dimension_numbers = #tpu.dot_dimension_numbers<[1], [1], [0], [0], [0, 0, 1, 0], [], []>} : vector<16x128xf32>, vector<16x128xf32>, vector<16x16xf32> -> vector<16x16xf32>
    %c0_4 = arith.constant 0 : index
    %c0_5 = arith.constant 0 : index
    %6 = vector.load %arg5[%c0_4, %c0_5] : memref<16x1xf32, #tpu.memory_space<vmem>>, vector<16x1xf32>
    %c0_6 = arith.constant 0 : index
    %c0_7 = arith.constant 0 : index
    %7 = vector.load %arg6[%c0_6, %c0_7] : memref<1x16xf32, #tpu.memory_space<vmem>>, vector<1x16xf32>
    %8 = vector.broadcast %6 : vector<16x1xf32> to vector<16x16xf32>
    %9 = vector.broadcast %7 : vector<1x16xf32> to vector<16x16xf32>
    %10 = arith.addf %8, %9 : vector<16x16xf32>
    %cst_8 = arith.constant 2.000000e+00 : f32
    %11 = vector.broadcast %cst_8 : f32 to vector<16x16xf32>
    %12 = arith.mulf %11, %5 : vector<16x16xf32>
    %13 = arith.subf %10, %12 : vector<16x16xf32>
    %cst_9 = arith.constant 0.000000e+00 : f32
    %14 = vector.broadcast %cst_9 : f32 to vector<16x16xf32>
    %15 = arith.maximumf %13, %14 : vector<16x16xf32>
    %c4 = arith.constant 4 : index
    %16 = memref.load %arg2[%c4] : memref<5xf32, #tpu.memory_space<smem>>
    %17 = vector.broadcast %16 : f32 to vector<16x16xf32>
    %18 = arith.mulf %15, %17 : vector<16x16xf32>
    %19 = math.exp %18 : vector<16x16xf32>
    %20 = arith.mulf %19, %19 : vector<16x16xf32>
    %21 = arith.addf %19, %20 : vector<16x16xf32>
    %22 = arith.mulf %20, %20 : vector<16x16xf32>
    %23 = arith.addf %21, %22 : vector<16x16xf32>
    %24 = arith.mulf %22, %22 : vector<16x16xf32>
    %25 = arith.addf %23, %24 : vector<16x16xf32>
    %26 = arith.mulf %24, %24 : vector<16x16xf32>
    %27 = arith.addf %25, %26 : vector<16x16xf32>
    %c0_10 = arith.constant 0 : index
    %c0_11 = arith.constant 0 : index
    %28 = vector.load %arg8[%c0_10, %c0_11] : memref<1x16xf32, #tpu.memory_space<vmem>>, vector<1x16xf32>
    %29 = vector.broadcast %28 : vector<1x16xf32> to vector<16x16xf32>
    %30 = arith.mulf %27, %29 : vector<16x16xf32>
    %cst_12 = arith.constant dense<0.000000e+00> : vector<16xf32>
    %31 = vector.multi_reduction <add>, %30, %cst_12 [1] : vector<16x16xf32> to vector<16xf32>
    %32 = vector.shape_cast %31 : vector<16xf32> to vector<16x1xf32>
    %c0_13 = arith.constant 0 : index
    %c0_14 = arith.constant 0 : index
    %33 = vector.load %arg9[%c0_13, %c0_14] : memref<16x1xf32, #tpu.memory_space<vmem>>, vector<16x1xf32>
    %c0_15 = arith.constant 0 : index
    %c0_16 = arith.constant 0 : index
    %34 = vector.load %arg7[%c0_15, %c0_16] : memref<16x1xf32, #tpu.memory_space<vmem>>, vector<16x1xf32>
    %35 = arith.mulf %32, %34 : vector<16x1xf32>
    %36 = arith.addf %33, %35 : vector<16x1xf32>
    %c0_17 = arith.constant 0 : index
    %c0_18 = arith.constant 0 : index
    %37 = vector.load %arg9[%c0_17, %c0_18] : memref<16x1xf32, #tpu.memory_space<vmem>>, vector<16x1xf32>
    tpu.vector_store %arg9[%c0_17, %c0_18], %36 {strides = array<i32>} : memref<16x1xf32, #tpu.memory_space<vmem>>, vector<16x1xf32>,
    return
  }
  func.func @transform_0(%arg0: i32, %arg1: i32) -> i32 {
    %c0_i32 = arith.constant 0 : i32
    %c0_i32_0 = arith.constant 0 : i32
    return %c0_i32 : i32
  }
  func.func @transform_1(%arg0: i32, %arg1: i32) -> (i32, i32) {
    %c0_i32 = arith.constant 0 : i32
    %c0_i32_0 = arith.constant 0 : i32
    return %arg0, %c0_i32 : i32, i32
  }
  func.func @transform_2(%arg0: i32, %arg1: i32) -> (i32, i32) {
    %c0_i32 = arith.constant 0 : i32
    %c0_i32_0 = arith.constant 0 : i32
    return %arg1, %c0_i32 : i32, i32
  }
  func.func @transform_3(%arg0: i32, %arg1: i32) -> (i32, i32) {
    %c0_i32 = arith.constant 0 : i32
    %c0_i32_0 = arith.constant 0 : i32
    return %arg0, %c0_i32 : i32, i32
  }
  func.func @transform_4(%arg0: i32, %arg1: i32) -> (i32, i32) {
    %c0_i32 = arith.constant 0 : i32
    %c0_i32_0 = arith.constant 0 : i32
    return %c0_i32, %arg1 : i32, i32
  }
  func.func @transform_5(%arg0: i32, %arg1: i32) -> (i32, i32) {
    %c0_i32 = arith.constant 0 : i32
    %c0_i32_0 = arith.constant 0 : i32
    return %arg0, %c0_i32 : i32, i32
  }
  func.func @transform_6(%arg0: i32, %arg1: i32) -> (i32, i32) {
    %c0_i32 = arith.constant 0 : i32
    %c0_i32_0 = arith.constant 0 : i32
    return %c0_i32, %arg1 : i32, i32
  }
  func.func @transform_7(%arg0: i32, %arg1: i32) -> (i32, i32) {
    %c0_i32 = arith.constant 0 : i32
    %c0_i32_0 = arith.constant 0 : i32
    return %arg0, %c0_i32 : i32, i32
  }
}

</mosaic_0001>

<bundles_post_ra>
// kernel: tpu_custom_call.1
= control target key start
LH: loop header
LB: loop body
LE: loop exit
PB: predicated region body
PF: predicated region fallthrough
CT: control target
= control target key end

     0   :  { %12 = vsyncpa [#allocation3], 0  ;;  %s342_s0 = inlined_call_operand.vmem [shape: f32[5], index: 0, kind: input, shape index: {}]   ;;  %s343_s1 = inlined_call_operand.vmem [shape: f32[16,128], index: 1, kind: input, shape index: {}]   ;;  %s344_s2 = inlined_call_operand.vmem [shape: f32[16,128], index: 2, kind: input, shape index: {}]   ;;  %s345_s3 = inlined_call_operand.vmem [shape: f32[16,1], index: 3, kind: input, shape index: {}]   ;;  %s346_s4 = inlined_call_operand.vmem [shape: f32[1,16], index: 4, kind: input, shape index: {}]   ;;  %s347_s5 = inlined_call_operand.vmem [shape: f32[16,1], index: 5, kind: input, shape index: {}]   ;;  %s348_s6 = inlined_call_operand.vmem [shape: f32[1,16], index: 6, kind: input, shape index: {}]   ;;  %s349_s7 = inlined_call_operand.vmem [shape: f32[16,1], index: 7, kind: output, shape index: {}]  }
   0x1   :  { %s19_s26 = sshll.u32 %s342_s0, 4  ;;  %s20_s26 = int_to_ptr.vmem [resolvable:$true] %s19_s26 }
   0x2   :  { %s234_s27 = scalar_lea.vmem %s20_s26, 16  ;;  %p239_p1 = scmp.lt.s32.totalorder %s20_s26, %s20_s26 }
   0x3   :  { %p235_p0 = scmp.ne.s32.totalorder %s20_s26, %s234_s27  ;;  %p240_p2 = scmp.lt.s32.totalorder %s234_s27, %s234_s27 }
   0x5   :  { %p241_p3 = por %p240_p2, %p239_p1 }
   0x7   :  { %p242_p4 = pnand %p241_p3, %p235_p0 }
   0x9   :  { %245 = shalt.err (!%p242_p4)
}
   0xa   :  { %s248_s28 = smov [#allocation2]  }
   0xb   :  { %22 = dma.vmem_to_smem %s20_s26, 16, %s248_s28, [#allocation3]  }
   0xc   :  { %246 = dma.done.wait [#allocation3], 16  }
   0xd   :  { %247 = vsyncadd [#allocation3], 4294967280 }
   0xe   :  { %38 = sfence }
   0xf   :  { %v48_v0 = vld [vmem:[%s344_s2] sm:$0xff]  ;;  %v49_v1 = vld [vmem:[%s344_s2 + $0x8] sm:$0xff]  ;;  %v249_v4 = vmov 0   ;;  %s209_s18 = sld [smem:[#allocation2 + $0x4]]  ;;  %vm185_vm0 = vcmask 130048   ;;  %vm43_vm1 = vcmask 7168  }
  0x10   :  { %v46_v2 = vld [vmem:[%s343_s1] sm:$0xff]  ;;  %v222_v3 = vpack.c.bf16 %v49_v1, %v48_v0  ;;  %229 = vset.pattern.permute.xlu0 %v249_v4  ;;  %v126_v6 = vld [vmem:[%s345_s3 + $0x8] sm:$0xff]  ;;  %v250_v49 = vmov 0.0  }
  0x11   :  { %219 = vmatprep.mubr.f32.mxu0 %v46_v2  ;;  %v125_v5 = vld [vmem:[%s345_s3] sm:$0xff]  ;;  %v47_v7 = vld [vmem:[%s343_s1 + $0x8] sm:$0xff]  ;;  %44 = vst.msk [vmem:[%s349_s7] sm:$0xff] %vm43_vm1, %v250_v49  ;;  %45 = vst.msk [vmem:[%s349_s7 + $0x8] sm:$0xff] %vm43_vm1, %v250_v49 }
  0x12   :  { %130 = vperm.xlu0 %229, %v125_v5   ;;  %223 = vmatprep.subr.bf16.mxu0 %v222_v3  ;;  %v208_v9 = vld [vmem:[%s346_s4] ss:$0 sm:$0xff]  ;;  %v195_v54 = vld [vmem:[%s347_s5 + $0x8] sm:$0xff] }
  0x13   :  { %225 = vmatpush3.bf16.xpose.msra.mxu0 %v222_v3  ;;  %v210_v42 = vld [vmem:[%s348_s6] ss:$0 sm:$0xff] }
  0x14   :  { %v194_v50 = vld [vmem:[%s347_s5] sm:$0xff] }
  0x15   :  { %v153_v18 = vstv %s209_s18 }
  0x16   :  { %135 = vperm.xlu0 %229, %v126_v6  }
  0x18   :  { %v192_v52 = vld [vmem:[%s349_s7] sm:$0xff]  ;;  %v193_v57 = vld [vmem:[%s349_s7 + $0x8] sm:$0xff] }
  0x1a   :  { %220 = vmatmul.mubr.f32.vlgmr.msra.gmra.mrb[0].mxu0 %v47_v7 }
  0x91   :  { %v131_v8 = vpop.permute.xlu0 %130 }
  0x92   :  { %v144_v12 = vadd.f32 %v208_v9, %v131_v8 }
  0x95   :  { %v136_v10 = vpop.permute.xlu0 %135 }
  0x96   :  { %v145_v11 = vadd.f32 %v208_v9, %v136_v10 }
  0xed   :  { %v221_v13 = vpop.f32.mrb[0].mxu0 }
  0xee   :  { %v147_v14 = vmul.f32 2.0, %v221_v13  ;;  %v116_v15 = vpop.f32.mrb[1].mxu0 }
  0xef   :  { %v146_v16 = vmul.f32 2.0, %v116_v15 }
  0xf0   :  { %v149_v17 = vsub.f32 %v145_v11, %v147_v14 }
  0xf1   :  { %v148_v19 = vsub.f32 %v144_v12, %v146_v16 }
  0xf2   :  { %v151_v20 = vmax.f32 %v149_v17, 0.0 }
  0xf3   :  { %v150_v21 = vmax.f32 %v148_v19, 0.0 }
  0xf4   :  { %v155_v22 = vmul.f32 %v153_v18, %v151_v20 }
  0xf5   :  { %v154_v23 = vmul.f32 %v153_v18, %v150_v21 }
  0xf6   :  { %v158_v24 = vmul.f32 1.442695, %v155_v22 }
  0xf7   :  { %v156_v25 = vmul.f32 1.442695, %v154_v23 }
  0xf8   :  { %230 = vpow2.f32 %v158_v24 }
  0xf9   :  { %232 = vpow2.f32 %v156_v25 }
 0x102   :  { %v231_v26 = vpop.eup %230 }
 0x103   :  { %v233_v27 = vpop.eup %232  ;;  %v161_v28 = vmul.f32 %v231_v26, %v231_v26 }
 0x104   :  { %v160_v29 = vmul.f32 %v233_v27, %v233_v27 }
 0x105   :  { %v163_v30 = vadd.f32 %v231_v26, %v161_v28  ;;  %v165_v31 = vmul.f32 %v161_v28, %v161_v28 }
 0x106   :  { %v162_v32 = vadd.f32 %v233_v27, %v160_v29  ;;  %v164_v33 = vmul.f32 %v160_v29, %v160_v29 }
 0x107   :  { %v167_v34 = vadd.f32 %v165_v31, %v163_v30  ;;  %v169_v35 = vmul.f32 %v165_v31, %v165_v31 }
 0x108   :  { %v166_v36 = vadd.f32 %v164_v33, %v162_v32  ;;  %v168_v37 = vmul.f32 %v164_v33, %v164_v33 }
 0x109   :  { %v171_v38 = vadd.f32 %v169_v35, %v167_v34  ;;  %v173_v39 = vmul.f32 %v169_v35, %v169_v35 }
 0x10a   :  { %v170_v40 = vadd.f32 %v168_v37, %v166_v36  ;;  %v172_v41 = vmul.f32 %v168_v37, %v168_v37 }
 0x10b   :  { %v175_v44 = vadd.f32 %v173_v39, %v171_v38 }
 0x10c   :  { %v174_v43 = vadd.f32 %v172_v41, %v170_v40 }
 0x10d   :  { %v184_v47 = vmul.f32 %v210_v42, %v175_v44 }
 0x10e   :  { %v183_v45 = vmul.f32 %v210_v42, %v174_v43 }
 0x10f   :  { %v189_v48 = vsel %vm185_vm0, %v184_v47, 0.0 }
 0x110   :  { %v186_v46 = vsel %vm185_vm0, %v183_v45, 0.0 }
 0x111   :  { %187 = vadd.xlane.f32.xlu1 %v186_v46 }
 0x115   :  { %190 = vadd.xlane.f32.xlu1 %v189_v48 }
 0x19e   :  { %v188_v51 = vpop.xlane.xlu1 %187 }
 0x19f   :  { %v196_v53 = vmul.f32 %v194_v50, %v188_v51 }
 0x1a1   :  { %v198_v55 = vadd.f32 %v196_v53, %v192_v52 }
 0x1a2   :  { %v191_v56 = vpop.xlane.xlu1 %190 }
 0x1a3   :  { %201 = vst.msk [vmem:[%s349_s7] sm:$0xff] %vm43_vm1, %v198_v55  ;;  %v197_v58 = vmul.f32 %v195_v54, %v191_v56 }
 0x1a5   :  { %v199_v59 = vadd.f32 %v197_v58, %v193_v57 }
 0x1a7   :  { %202 = vst.msk [vmem:[%s349_s7 + $0x8] sm:$0xff] %vm43_vm1, %v199_v59 }
 0x1a8   :  { %207 = vsyncpa [#allocation3], 1 }

</bundles_post_ra>
